<compile_context>
chip_gen: v5e
topology: v5e:2x2
jax: 0.10.0
libtpu: 0.0.40
codegen_flags: <defaults>
</compile_context>

<pallas_src>
import jax
import jax.numpy as jnp
from jax.experimental import pallas as pl
from jax.experimental.pallas import tpu as pltpu


LEAKY_SLOPE = 0.01   # torch.nn.LeakyReLU default negative_slope
_LANE = 128          # vreg lane width
_SUBLANE = 8         # vreg sublane count (f32)


def _round_up(n, m):
    return ((n + m - 1) // m) * m


def _make_defender_kernel(n_layers, in_dim, out_dim, compute_dtype):
    """Fused-MLP kernel: stacked weights (L,P,P), stacked biases (L,1,P)."""

    def kernel(x_ref, w_ref, b_ref, o_ref):
        h = x_ref[...].astype(compute_dtype)          # (bt, in_dim)
        for li in range(n_layers):                    # static unroll
            w = w_ref[li]                             # (P, P), compute_dtype
            if li == 0 and in_dim < w.shape[0]:
                w = w[:in_dim, :]                     # drop zero-padded K rows
            b = b_ref[li]                             # (1, P), f32
            h = jnp.dot(h, w, preferred_element_type=jnp.float32) + b
            if li < n_layers - 1:
                # LeakyReLU on the f32 accumulator (VPU), then back to MXU dtype.
                h = jnp.where(h > 0, h, LEAKY_SLOPE * h).astype(compute_dtype)
        o_ref[...] = h[:, :out_dim].astype(o_ref.dtype)

    return kernel


def defender_forward(x, params, *, max_rows_per_tile=1024,
                     compute_dtype=jnp.bfloat16):
    """Run the Defender MLP as a single fused Pallas kernel.

    x:                 (B, sensors + noise_size)
    params:            list of (W, b), W: (in, out), b: (1, out)
    max_rows_per_tile: upper bound on rows per grid step (whole batch if it fits)
    compute_dtype:     dtype fed to the MXU (weights/activations); f32 accumulation.
                       None -> use x.dtype.
    """
    B, in_dim = x.shape
    n_layers = len(params)
    out_dim = params[-1][0].shape[1]
    if compute_dtype is None:
        compute_dtype = x.dtype

    # ---- pad + stack weights/biases (only the weights see the 128-lane pad) ----
    dims = [in_dim] + [w.shape[1] for (w, _) in params]
    P = max(_round_up(d, _LANE) for d in dims)

    w_stack = jnp.stack([
        jnp.pad(w, ((0, P - w.shape[0]), (0, P - w.shape[1])))
        for (w, _) in params
    ]).astype(compute_dtype)                          # (L, P, P)
    b_stack = jnp.stack([
        jnp.pad(b, ((0, 0), (0, P - b.shape[1])))
        for (_, b) in params
    ]).astype(jnp.float32)                            # (L, 1, P)

    # ---- batch tiling: whole batch in one step when possible, else big tiles ----
    max_rows = max(_SUBLANE, (int(max_rows_per_tile) // _SUBLANE) * _SUBLANE)
    bt = B if B <= max_rows else max_rows             # full-array block may be any size
    grid = (pl.cdiv(B, bt),)                          # partial last block is fine

    # ---- advisory cost estimate (real dims) ----
    flops = 2 * B * sum(dims[i] * dims[i + 1] for i in range(n_layers))
    bytes_accessed = (
        x.size * x.dtype.itemsize
        + w_stack.size * w_stack.dtype.itemsize
        + b_stack.size * b_stack.dtype.itemsize
        + B * out_dim * jnp.dtype(x.dtype).itemsize
    )

    kernel = _make_defender_kernel(n_layers, in_dim, out_dim, compute_dtype)

    return pl.pallas_call(
        kernel,
        out_shape=jax.ShapeDtypeStruct((B, out_dim), x.dtype),
        grid_spec=pltpu.PrefetchScalarGridSpec(
            num_scalar_prefetch=0,
            grid=grid,
            in_specs=[
                pl.BlockSpec((bt, in_dim), lambda i: (i, 0)),          # x tile
                pl.BlockSpec((n_layers, P, P), lambda i: (0, 0, 0)),   # resident weights
                pl.BlockSpec((n_layers, 1, P), lambda i: (0, 0, 0)),   # resident biases
            ],
            out_specs=pl.BlockSpec((bt, out_dim), lambda i: (i, 0)),
        ),
        compiler_params=pltpu.CompilerParams(
            dimension_semantics=("parallel",),
        ),
        cost_estimate=pl.CostEstimate(
            flops=flops, transcendentals=0, bytes_accessed=bytes_accessed
        ),
    )(x, w_stack, b_stack)


def init_defender_params(key, input_dim, layer_size, n_hidden_layers, output_dim):
    """Deterministic init mimicking torch.nn.Linear default (U[-1/sqrt(fan_in), +])."""
    dims = [input_dim] + [layer_size] * n_hidden_layers + [output_dim]
    params = []
    for li in range(len(dims) - 1):
        fan_in, fan_out = dims[li], dims[li + 1]
        key, kw, kb = jax.random.split(key, 3)
        bound = 1.0 / jnp.sqrt(jnp.float32(fan_in))
        w = jax.random.uniform(kw, (fan_in, fan_out), jnp.float32, -bound, bound)
        b = jax.random.uniform(kb, (1, fan_out), jnp.float32, -bound, bound)
        params.append((w, b))
    return params


def defender_reference(x, params, compute_dtype=jnp.bfloat16):
    """Pure-JAX reference of the same forward pass (matches kernel's cast scheme)."""
    h = x
    for li, (w, b) in enumerate(params):
        h = jnp.dot(h.astype(compute_dtype), w.astype(compute_dtype),
                    preferred_element_type=jnp.float32) + b.astype(jnp.float32)
        if li < len(params) - 1:
            h = jnp.where(h > 0, h, LEAKY_SLOPE * h)
    return h.astype(x.dtype)


if __name__ == "__main__":
    # Synthetic "model": agent.sensors = 24, agent.actuators = 4
    sensors, actuators = 24, 4
    noise_size, n_hidden_layers, layer_size, n_coeff = 8, 2, 32, 8
    input_dim = sensors + noise_size          # 32
    output_dim = actuators * n_coeff          # 32

    key = jax.random.PRNGKey(0)
    kp, kx1, kx2, kx3 = jax.random.split(key, 4)
    params = init_defender_params(kp, input_dim, layer_size, n_hidden_layers, output_dim)

    # --- tiny batch, default bf16 compute, single grid step ---
    x1 = jax.random.normal(kx1, (8, input_dim), dtype=jnp.float32)
    o1 = jax.block_until_ready(defender_forward(x1, params))
    r1 = defender_reference(x1, params, jnp.bfloat16)
    assert o1.shape == (8, output_dim)
    assert jnp.allclose(o1, r1, atol=1e-2, rtol=1e-2)
    # sanity against pure-f32 math (bf16 input/weight rounding only)
    assert jnp.allclose(o1, defender_reference(x1, params, jnp.float32),
                        atol=1e-1, rtol=1e-1)

    # --- batch not a multiple of 8, explicit f32 compute, single full-batch block ---
    x2 = jax.random.normal(kx2, (300, input_dim), dtype=jnp.float32)
    o2 = jax.block_until_ready(
        defender_forward(x2, params, compute_dtype=jnp.float32))
    r2 = defender_reference(x2, params, jnp.float32)
    assert o2.shape == (300, output_dim)
    assert jnp.allclose(o2, r2, atol=1e-4, rtol=1e-4)

    # --- multi-step grid with a partial last block (600 rows, 256-row tiles), bf16 ---
    x3 = jax.random.normal(kx3, (600, input_dim), dtype=jnp.float32)
    o3 = jax.block_until_ready(
        defender_forward(x3, params, max_rows_per_tile=256))
    r3 = defender_reference(x3, params, jnp.bfloat16)
    assert o3.shape == (600, output_dim)
    assert jnp.allclose(o3, r3, atol=1e-2, rtol=1e-2)

    print("KERNEL_OK")
</pallas_src>

<mosaic_0001>
module attributes {stable_mosaic.version = 11 : i64} {
  func.func @kernel(%arg0: i32, %arg1: memref<8x32xf32, #tpu.memory_space<vmem>>, %arg2: memref<3x128x128xbf16, #tpu.memory_space<vmem>>, %arg3: memref<3x1x128xf32, #tpu.memory_space<vmem>>, %arg4: memref<8x32xf32, #tpu.memory_space<vmem>>) attributes {dimension_semantics = [#tpu.dimension_semantics<parallel>], iteration_bounds = array<i64: 1>, scalar_prefetch = 0 : i64, scratch_operands = 0 : i64, tpu.core_type = #tpu.core_type<tc>, window_params = [{transform_indices = @transform_0, window_bounds = array<i64: 8, 32>}, {pipeline_mode = #tpu.pipeline_mode<synchronous>, transform_indices = @transform_1, window_bounds = array<i64: 3, 128, 128>}, {pipeline_mode = #tpu.pipeline_mode<synchronous>, transform_indices = @transform_2, window_bounds = array<i64: 3, 1, 128>}, {transform_indices = @transform_3, window_bounds = array<i64: 8, 32>}]} {
    %c0 = arith.constant 0 : index
    %c0_0 = arith.constant 0 : index
    %0 = vector.load %arg1[%c0, %c0_0] : memref<8x32xf32, #tpu.memory_space<vmem>>, vector<8x32xf32>
    %1 = arith.truncf %0 : vector<8x32xf32> to vector<8x32xbf16>
    %c0_1 = arith.constant 0 : index
    %c0_2 = arith.constant 0 : index
    %c0_3 = arith.constant 0 : index
    %2 = vector.load %arg2[%c0_1, %c0_2, %c0_3] : memref<3x128x128xbf16, #tpu.memory_space<vmem>>, vector<1x128x128xbf16>
    %3 = vector.shape_cast %2 : vector<1x128x128xbf16> to vector<128x128xbf16>
    %4 = vector.extract_strided_slice %3 {offsets = [0, 0], sizes = [32, 128], strides = [1, 1]} : vector<128x128xbf16> to vector<32x128xbf16>
    %c0_4 = arith.constant 0 : index
    %c0_5 = arith.constant 0 : index
    %c0_6 = arith.constant 0 : index
    %5 = vector.load %arg3[%c0_4, %c0_5, %c0_6] : memref<3x1x128xf32, #tpu.memory_space<vmem>>, vector<1x1x128xf32>
    %6 = vector.shape_cast %5 : vector<1x1x128xf32> to vector<1x128xf32>
    %cst = arith.constant dense<0.000000e+00> : vector<8x128xf32>
    %7 = tpu.matmul %1, %4, %cst {dimension_numbers = #tpu.dot_dimension_numbers<[1], [0], [0], [1], [0, 0, 1, 1], [], []>} : vector<8x32xbf16>, vector<32x128xbf16>, vector<8x128xf32> -> vector<8x128xf32>
    %8 = vector.broadcast %6 : vector<1x128xf32> to vector<8x128xf32>
    %9 = arith.addf %7, %8 : vector<8x128xf32>
    %cst_7 = arith.constant 0.000000e+00 : f32
    %10 = vector.broadcast %cst_7 : f32 to vector<8x128xf32>
    %11 = arith.cmpf ogt, %9, %10 : vector<8x128xf32>
    %cst_8 = arith.constant 0.00999999977 : f32
    %12 = vector.broadcast %cst_8 : f32 to vector<8x128xf32>
    %13 = arith.mulf %12, %9 : vector<8x128xf32>
    %14 = arith.select %11, %9, %13 : vector<8x128xi1>, vector<8x128xf32>
    %15 = arith.truncf %14 : vector<8x128xf32> to vector<8x128xbf16>
    %c1 = arith.constant 1 : index
    %c0_9 = arith.constant 0 : index
    %c0_10 = arith.constant 0 : index
    %16 = vector.load %arg2[%c1, %c0_9, %c0_10] : memref<3x128x128xbf16, #tpu.memory_space<vmem>>, vector<1x128x128xbf16>
    %17 = vector.shape_cast %16 : vector<1x128x128xbf16> to vector<128x128xbf16>
    %c1_11 = arith.constant 1 : index
    %c0_12 = arith.constant 0 : index
    %c0_13 = arith.constant 0 : index
    %18 = vector.load %arg3[%c1_11, %c0_12, %c0_13] : memref<3x1x128xf32, #tpu.memory_space<vmem>>, vector<1x1x128xf32>
    %19 = vector.shape_cast %18 : vector<1x1x128xf32> to vector<1x128xf32>
    %cst_14 = arith.constant dense<0.000000e+00> : vector<8x128xf32>
    %20 = tpu.matmul %15, %17, %cst_14 {dimension_numbers = #tpu.dot_dimension_numbers<[1], [0], [0], [1], [0, 0, 1, 1], [], []>} : vector<8x128xbf16>, vector<128x128xbf16>, vector<8x128xf32> -> vector<8x128xf32>
    %21 = vector.broadcast %19 : vector<1x128xf32> to vector<8x128xf32>
    %22 = arith.addf %20, %21 : vector<8x128xf32>
    %cst_15 = arith.constant 0.000000e+00 : f32
    %23 = vector.broadcast %cst_15 : f32 to vector<8x128xf32>
    %24 = arith.cmpf ogt, %22, %23 : vector<8x128xf32>
    %cst_16 = arith.constant 0.00999999977 : f32
    %25 = vector.broadcast %cst_16 : f32 to vector<8x128xf32>
    %26 = arith.mulf %25, %22 : vector<8x128xf32>
    %27 = arith.select %24, %22, %26 : vector<8x128xi1>, vector<8x128xf32>
    %28 = arith.truncf %27 : vector<8x128xf32> to vector<8x128xbf16>
    %c2 = arith.constant 2 : index
    %c0_17 = arith.constant 0 : index
    %c0_18 = arith.constant 0 : index
    %29 = vector.load %arg2[%c2, %c0_17, %c0_18] : memref<3x128x128xbf16, #tpu.memory_space<vmem>>, vector<1x128x128xbf16>
    %30 = vector.shape_cast %29 : vector<1x128x128xbf16> to vector<128x128xbf16>
    %c2_19 = arith.constant 2 : index
    %c0_20 = arith.constant 0 : index
    %c0_21 = arith.constant 0 : index
    %31 = vector.load %arg3[%c2_19, %c0_20, %c0_21] : memref<3x1x128xf32, #tpu.memory_space<vmem>>, vector<1x1x128xf32>
    %32 = vector.shape_cast %31 : vector<1x1x128xf32> to vector<1x128xf32>
    %cst_22 = arith.constant dense<0.000000e+00> : vector<8x128xf32>
    %33 = tpu.matmul %28, %30, %cst_22 {dimension_numbers = #tpu.dot_dimension_numbers<[1], [0], [0], [1], [0, 0, 1, 1], [], []>} : vector<8x128xbf16>, vector<128x128xbf16>, vector<8x128xf32> -> vector<8x128xf32>
    %34 = vector.broadcast %32 : vector<1x128xf32> to vector<8x128xf32>
    %35 = arith.addf %33, %34 : vector<8x128xf32>
    %36 = vector.extract_strided_slice %35 {offsets = [0, 0], sizes = [8, 32], strides = [1, 1]} : vector<8x128xf32> to vector<8x32xf32>
    %c0_23 = arith.constant 0 : index
    %c0_24 = arith.constant 0 : index
    %37 = vector.load %arg4[%c0_23, %c0_24] : memref<8x32xf32, #tpu.memory_space<vmem>>, vector<8x32xf32>
    tpu.vector_store %arg4[%c0_23, %c0_24], %36 {strides = array<i32>} : memref<8x32xf32, #tpu.memory_space<vmem>>, vector<8x32xf32>,
    return
  }
  func.func @transform_0(%arg0: i32) -> (i32, i32) {
    %c0_i32 = arith.constant 0 : i32
    %c0_i32_0 = arith.constant 0 : i32
    return %arg0, %c0_i32 : i32, i32
  }
  func.func @transform_1(%arg0: i32) -> (i32, i32, i32) {
    %c0_i32 = arith.constant 0 : i32
    %c0_i32_0 = arith.constant 0 : i32
    %c0_i32_1 = arith.constant 0 : i32
    %c0_i32_2 = arith.constant 0 : i32
    return %c0_i32, %c0_i32_0, %c0_i32_1 : i32, i32, i32
  }
  func.func @transform_2(%arg0: i32) -> (i32, i32, i32) {
    %c0_i32 = arith.constant 0 : i32
    %c0_i32_0 = arith.constant 0 : i32
    %c0_i32_1 = arith.constant 0 : i32
    %c0_i32_2 = arith.constant 0 : i32
    return %c0_i32, %c0_i32_0, %c0_i32_1 : i32, i32, i32
  }
  func.func @transform_3(%arg0: i32) -> (i32, i32) {
    %c0_i32 = arith.constant 0 : i32
    %c0_i32_0 = arith.constant 0 : i32
    return %arg0, %c0_i32 : i32, i32
  }
}

</mosaic_0001>

<bundles_post_ra>
// kernel: tpu_custom_call.1
= control target key start
LH: loop header
LB: loop body
LE: loop exit
PB: predicated region body
PF: predicated region fallthrough
CT: control target
= control target key end

     0   :  { %8 = vsyncpa [#allocation3], 0  ;;  %s539_s0 = inlined_call_operand.hbm [shape: f32[8,32], index: 0, kind: input, shape index: {}]   ;;  %s540_s1 = inlined_call_operand.hbm [shape: bf16[3,128,128], index: 1, kind: input, shape index: {}]   ;;  %s541_s2 = inlined_call_operand.hbm [shape: f32[3,1,128], index: 2, kind: input, shape index: {}]   ;;  %s542_s3 = inlined_call_operand.hbm [shape: f32[8,32], index: 3, kind: output, shape index: {}]  }
   0x1   :  { %9 = vsyncpa [#allocation6], 0  ;;  %s26_s14 = sshll.u32 %s540_s1, 4  ;;  %s27_s14 = int_to_ptr.hbm [resolvable:$true] %s26_s14 }
   0x2   :  { %10 = vsyncpa [#allocation4], 0  ;;  %s497_s15 = smov [#allocation5]   ;;  %s16_s19 = sshll.u32 %s539_s0, 4  ;;  %s17_s19 = int_to_ptr.hbm [resolvable:$true] %s16_s19 }
   0x3   :  { %s28_s16 = sshll.u32 %s497_s15, 4  ;;  %s498_s20 = smov 64   ;;  %s29_s16 = int_to_ptr.vmem [resolvable:$true] %s28_s16 }
   0x4   :  { %s499_s21 = smov 4   ;;  %s500_s22 = smov [#allocation2]  }
   0x5   :  { %34 = dma.hbm_to_vmem [thread:$0]  %s27_s14, 3072, %s29_s16, [#allocation6], %s498_s20, %s498_s20, %s499_s21  }
   0x6   :  { %s18_s23 = sshll.u32 %s500_s22, 4  ;;  %s39_s26 = sshll.u32 %s541_s2, 4  ;;  %s19_s23 = int_to_ptr.vmem [resolvable:$true] %s18_s23  ;;  %s40_s26 = int_to_ptr.hbm [resolvable:$true] %s39_s26 }
   0x7   :  { %21 = dma.hbm_to_vmem [thread:$0]  %s17_s19, 128, %s19_s23, [#allocation3]  }
   0x8   :  { %s501_s1 = smov [#allocation7]   ;;  %s502_s28 = smov 16  }
   0x9   :  { %s41_s27 = sshll.u32 %s501_s1, 4  ;;  %s503_s29 = smov 1   ;;  %s42_s27 = int_to_ptr.vmem [resolvable:$true] %s41_s27 }
   0xa   :  { %47 = dma.hbm_to_vmem [thread:$0]  %s40_s26, 48, %s42_s27, [#allocation6], %s502_s28, %s502_s28, %s503_s29  }
   0xb   :  { %491 = dma.done.wait [#allocation3], 128  }
   0xc   :  { %492 = vsyncadd [#allocation3], 4294967168 }
   0xd   :  { %493 = dma.done.wait [#allocation6], 3120  }
   0xe   :  { %494 = vsyncadd [#allocation6], 4294964176  ;;  %v367_v0 = vld [vmem:[#allocation5 + $0x8] sm:$0xff]  ;;  %v375_v1 = vld [vmem:[#allocation5 + $0x78] sm:$0xff]  ;;  %vm83_vm0 = vcmask 261120   ;;  %s504_s0 = smov [#allocation8]  }
   0xf   :  { %93 = vmatpush.bf16.msra.mxu0 %v367_v0  ;;  %v366_v2 = vld [vmem:[#allocation5] sm:$0xff]  ;;  %v61_v3 = vld [vmem:[#allocation2] sm:$0xff]  ;;  %174 = vmatpush.bf16.msra.mxu1 %v375_v1  ;;  %v374_v4 = vld [vmem:[#allocation5 + $0x70] sm:$0xff]  ;;  %s280_s2 = sshll.u32 %s504_s0, 4  ;;  %s282_s5 = sshll.u32 %s542_s3, 4  ;;  %s281_s2 = int_to_ptr.vmem [resolvable:$true] %s280_s2  ;;  %s283_s5 = int_to_ptr.hbm [resolvable:$true] %s282_s5 }
  0x10   :  { %v62_v5 = vpack.c.bf16 %v61_v3, %v61_v3  ;;  %v373_v6 = vld [vmem:[#allocation5 + $0x68] sm:$0xff]  ;;  %v372_v7 = vld [vmem:[#allocation5 + $0x60] sm:$0xff]  ;;  %v371_v8 = vld [vmem:[#allocation5 + $0x58] sm:$0xff] }
  0x11   :  { %v370_v9 = vld [vmem:[#allocation5 + $0x50] sm:$0xff]  ;;  %v369_v10 = vld [vmem:[#allocation5 + $0x48] sm:$0xff]  ;;  %v368_v11 = vld [vmem:[#allocation5 + $0x40] sm:$0xff] }
  0x12   :  { %v383_v12 = vld [vmem:[#allocation5 + $0xb8] sm:$0xff]  ;;  %v382_v13 = vld [vmem:[#allocation5 + $0xb0] sm:$0xff]  ;;  %v381_v14 = vld [vmem:[#allocation5 + $0xa8] sm:$0xff] }
  0x13   :  { %94 = vmatpush.bf16.msra.mxu0 %v366_v2  ;;  %175 = vmatpush.bf16.msra.mxu1 %v374_v4  ;;  %v380_v15 = vld [vmem:[#allocation5 + $0xa0] sm:$0xff]  ;;  %v379_v16 = vld [vmem:[#allocation5 + $0x98] sm:$0xff]  ;;  %v378_v17 = vld [vmem:[#allocation5 + $0x90] sm:$0xff] }
  0x14   :  { %261 = vmatpush.bf16.msra.mxu2 %v383_v12  ;;  %v392_v18 = vld [vmem:[#allocation7] ss:$0 sm:$0xff]  ;;  %v377_v25 = vld [vmem:[#allocation5 + $0x88] sm:$0xff]  ;;  %v393_v27 = vld [vmem:[#allocation7 + $0x1] ss:$0 sm:$0xff] }
  0x15   :  { %v376_v26 = vld [vmem:[#allocation5 + $0x80] sm:$0xff] }
  0x16   :  { %301 = vmatmul.msk.bf16.vlgmr.msra.gmra.mxu0 %vm83_vm0, %v62_v5  ;;  %v394_v34 = vld [vmem:[#allocation7 + $0x2] ss:$0 sm:$0xff] }
  0x17   :  { %176 = vmatpush.bf16.msra.mxu1 %v373_v6 }
  0x18   :  { %262 = vmatpush.bf16.msra.mxu2 %v382_v13 }
  0x1b   :  { %177 = vmatpush.bf16.msra.mxu1 %v372_v7 }
  0x1c   :  { %263 = vmatpush.bf16.msra.mxu2 %v381_v14 }
  0x1f   :  { %178 = vmatpush.bf16.msra.mxu1 %v371_v8 }
  0x20   :  { %264 = vmatpush.bf16.msra.mxu2 %v380_v15 }
  0x23   :  { %179 = vmatpush.bf16.msra.mxu1 %v370_v9 }
  0x24   :  { %265 = vmatpush.bf16.msra.mxu2 %v379_v16 }
  0x27   :  { %180 = vmatpush.bf16.msra.mxu1 %v369_v10 }
  0x28   :  { %266 = vmatpush.bf16.msra.mxu2 %v378_v17 }
  0x2b   :  { %181 = vmatpush.bf16.msra.mxu1 %v368_v11 }
  0x2c   :  { %267 = vmatpush.bf16.msra.mxu2 %v377_v25 }
  0x30   :  { %268 = vmatpush.bf16.msra.mxu2 %v376_v26 }
  0x93   :  { %v96_v19 = vpop.f32.mrf.mxu0 }
  0x94   :  { %v97_v20 = vadd.f32 %v392_v18, %v96_v19 }
  0x96   :  { %v101_v21 = vmul.f32 0.01, %v97_v20  ;;  %vm100_vm1 = vcmp.gt.f32.partialorder %v97_v20, 0.0 }
  0x98   :  { %v102_v22 = vsel %vm100_vm1, %v97_v20, %v101_v21 }
  0x99   :  { %v103_v23 = vpack.c.bf16 %v102_v22, %v102_v22 }
  0x9b   :  { %v98_v24 = vpop.f32.mrf.mxu0  ;;  %182 = vmatmul.bf16.vlgmr.msra.gmra.mxu1 %v103_v23 }
 0x118   :  { %v183_v28 = vpop.f32.mrf.mxu1 }
 0x119   :  { %v184_v29 = vadd.f32 %v393_v27, %v183_v28 }
 0x11b   :  { %v188_v30 = vmul.f32 0.01, %v184_v29  ;;  %vm187_vm2 = vcmp.gt.f32.partialorder %v184_v29, 0.0 }
 0x11d   :  { %v189_v31 = vsel %vm187_vm2, %v184_v29, %v188_v30 }
 0x11e   :  { %v190_v32 = vpack.c.bf16 %v189_v31, %v189_v31 }
 0x120   :  { %v185_v33 = vpop.f32.mrf.mxu1  ;;  %269 = vmatmul.bf16.vlgmr.msra.gmra.mxu2 %v190_v32 }
 0x1a3   :  { %v270_v35 = vpop.f32.mrf.mxu2 }
 0x1a4   :  { %v271_v36 = vadd.f32 %v394_v34, %v270_v35 }
 0x1a6   :  { %274 = vst.msk [vmem:[#allocation8] sm:$0xff] %vm83_vm0, %v271_v36 }
 0x1a7   :  { %285 = dma.vmem_to_hbm [thread:$0]  %s281_s2, 128, %s283_s5, [#allocation4]  }
 0x1ab   :  { %v272_v37 = vpop.f32.mrf.mxu2 }
 0x1ac   :  { %495 = dma.done.wait [#allocation4], 128  }
 0x1ad   :  { %496 = vsyncadd [#allocation4], 4294967168 }
 0x1ae   :  { %290 = vsyncpa [#allocation3], 1 }
 0x1af   :  { %291 = vsyncpa [#allocation6], 1 }
 0x1b0   :  { %292 = vsyncpa [#allocation4], 1 }

</bundles_post_ra>
